<compile_context>
chip_gen: v7x
topology: tpu7x:2x2x1
jax: 0.10.0
libtpu: 0.0.40
codegen_flags: <defaults>
</compile_context>

<pallas_src>
import math

import jax
import jax.numpy as jnp
from jax import lax
from jax.experimental import pallas as pl
from jax.experimental.pallas import tpu as pltpu


def _round_up(n, m):
    return ((n + m - 1) // m) * m


def _agunet_mlp_kernel(x_ref, w1_ref, b1_ref, w2_ref, b2_ref, w3_ref, b3_ref,
                       o_ref):
    """Fused 3-layer MLP.  x arrives batch-major (TM, F); every matmul runs on
    the MXU with bf16 operands / f32 accumulation, and hidden activations stay
    feature-major so the batch rides the lane axis (lane-dense output)."""
    x_bf = x_ref[...].astype(jnp.bfloat16)                    # (TM, F)

    # ---- Layer 1 (MXU): contract the feature axis of both operands, i.e.
    #      h[h1, m] = sum_f w1[h1, f] * x[m, f]   ->  (H1, TM).
    h = lax.dot_general(w1_ref[...], x_bf,
                        dimension_numbers=(((1,), (1,)), ((), ())),
                        preferred_element_type=jnp.float32)
    h = jnp.maximum(h + b1_ref[...], 0.0)                     # bias + ReLU (f32 VPU)

    # ---- Layer 2 (MXU): (H2, H1) @ (H1, TM) -> (H2, TM).
    h = jnp.dot(w2_ref[...], h.astype(jnp.bfloat16),
                preferred_element_type=jnp.float32)
    h = jnp.maximum(h + b2_ref[...], 0.0)

    # ---- Layer 3 (MXU): w3 zero-padded to 8 output rows (rows 1..7 are 0).
    o = jnp.dot(w3_ref[...], h.astype(jnp.bfloat16),
                preferred_element_type=jnp.float32)           # (8, TM)
    o_ref[...] = (o[0:1, :] + b3_ref[0, 0]).astype(o_ref.dtype)  # lane-dense store


def agunet_forward(x, params, *, tm_max=8192):
    """AguNet (num_tasks=1) forward. x: [N, 5] f32. Returns [out] with
    out: [N, 1], matching the PyTorch module."""
    w1, b1, w2, b2, w3, b3 = params
    n, f = x.shape
    h1 = w1.shape[0]
    h2 = w2.shape[0]
    assert tm_max % 128 == 0 and tm_max >= 128

    # Batch tiling: lane-aligned output width, tile capped by tm_max, and a
    # >=2-step grid when possible so ("parallel",) can use both v7x TensorCores.
    n_pad = _round_up(n, 128)
    tm = min(tm_max, n_pad)
    if n_pad // tm < 2 and tm > 128:
        tm = _round_up((n_pad + 1) // 2, 128)
    grid = ((n_pad + tm - 1) // tm,)

    # Tiny batches only (n < 128): pad x up to one full tile so every block is
    # fully in-bounds.  Larger batches are fed as-is; partial edge tiles are
    # clipped by the pipeline, so no padded copy of x is materialized.
    if n < tm:
        x = jnp.pad(x, ((0, tm - n), (0, 0)))

    # Weight prep (tiny arrays): bf16 operands for the MXU, biases as columns,
    # w3 zero-padded to 8 output rows, b3 passed through SMEM as a scalar.
    w1_bf = w1.astype(jnp.bfloat16)                       # (H1, F)
    w2_bf = w2.astype(jnp.bfloat16)                       # (H2, H1)
    w3_pad = jnp.zeros((8, h2), jnp.bfloat16).at[0, :].set(
        w3.reshape(h2).astype(jnp.bfloat16))              # (8, H2)
    b1_col = b1.reshape(h1, 1).astype(jnp.float32)
    b2_col = b2.reshape(h2, 1).astype(jnp.float32)
    b3_s = b3.reshape(1, 1).astype(jnp.float32)

    out_row = pl.pallas_call(
        _agunet_mlp_kernel,
        out_shape=jax.ShapeDtypeStruct((1, n_pad), jnp.float32),
        grid_spec=pltpu.PrefetchScalarGridSpec(
            num_scalar_prefetch=0,
            grid=grid,
            in_specs=[
                pl.BlockSpec((tm, f), lambda i: (i, 0)),         # x tile (batch-major)
                pl.BlockSpec((h1, f), lambda i: (0, 0)),         # w1 bf16 (resident)
                pl.BlockSpec((h1, 1), lambda i: (0, 0)),         # b1
                pl.BlockSpec((h2, h1), lambda i: (0, 0)),        # w2 bf16
                pl.BlockSpec((h2, 1), lambda i: (0, 0)),         # b2
                pl.BlockSpec((8, h2), lambda i: (0, 0)),         # w3 padded bf16
                pl.BlockSpec(memory_space=pltpu.MemorySpace.SMEM),  # b3 scalar
            ],
            out_specs=pl.BlockSpec((1, tm), lambda i: (0, i)),
        ),
        compiler_params=pltpu.CompilerParams(
            dimension_semantics=("parallel",),
            vmem_limit_bytes=40 * 1024 * 1024),
    )(x, w1_bf, b1_col, w2_bf, b2_col, w3_pad, b3_s)

    # TODO(synk): consumers that can accept a (N,) / (1, N) result should take
    # out_row[0, :n] directly and skip this extra reshape/copy pass.
    out = out_row[0, :n].reshape(n, 1)
    return [out]


def _xavier_uniform(key, fan_out, fan_in, dtype=jnp.float32):
    # Matches torch.nn.init.xavier_uniform_ for a (fan_out, fan_in) weight.
    bound = math.sqrt(6.0 / (fan_in + fan_out))
    return jax.random.uniform(key, (fan_out, fan_in), dtype,
                              minval=-bound, maxval=bound)


def init_params(key, in_dim=5, h1=128, h2=64, out_dim=1):
    k1, k2, k3, kb = jax.random.split(key, 4)
    kb1, kb2, kb3 = jax.random.split(kb, 3)
    w1 = _xavier_uniform(k1, h1, in_dim)          # (128, 5)   torch (out, in)
    w2 = _xavier_uniform(k2, h2, h1)              # (64, 128)
    w3 = _xavier_uniform(k3, out_dim, h2)         # (1, 64)
    # PyTorch zero-fills the biases; use small nonzero values here so the bias
    # path of the kernel is actually exercised by the checks.
    b1 = 0.05 * jax.random.normal(kb1, (h1,), jnp.float32)
    b2 = 0.05 * jax.random.normal(kb2, (h2,), jnp.float32)
    b3 = 0.05 * jax.random.normal(kb3, (out_dim,), jnp.float32)
    return (w1, b1, w2, b2, w3, b3)


def _reference(x, params, *, bf16=False):
    w1, b1, w2, b2, w3, b3 = params

    def mm(a, b):
        if bf16:
            return jnp.dot(a.astype(jnp.bfloat16), b.astype(jnp.bfloat16),
                           preferred_element_type=jnp.float32)
        return a @ b

    h = jnp.maximum(mm(x, w1.T) + b1, 0.0)
    h = jnp.maximum(mm(h, w2.T) + b2, 0.0)
    return mm(h, w3.T) + b3


if __name__ == "__main__":
    key = jax.random.PRNGKey(0)
    kx, kp = jax.random.split(key)
    params = init_params(kp)

    # Small input consistent with lin1 = Linear(5, 128): x is [batch, 5].
    x = jax.random.normal(kx, (8, 5), jnp.float32)
    out = agunet_forward(x, params)[0]
    jax.block_until_ready(out)
    assert out.shape == (8, 1), out.shape
    assert jnp.allclose(out, _reference(x, params, bf16=True),
                        atol=2e-3, rtol=2e-3), "mismatch vs bf16-matched ref"
    assert jnp.allclose(out, _reference(x, params),
                        atol=5e-2, rtol=5e-2), "mismatch vs f32 reference"

    # Multi-tile grid with a partial edge tile (no padded copy of x).
    x2 = jax.random.normal(jax.random.PRNGKey(1), (300, 5), jnp.float32)
    out2 = agunet_forward(x2, params, tm_max=128)[0]
    jax.block_until_ready(out2)
    assert out2.shape == (300, 1), out2.shape
    assert jnp.allclose(out2, _reference(x2, params, bf16=True),
                        atol=2e-3, rtol=2e-3), "mismatch on tiled batch"

    # Default tile size with the >=2-step grid split (v7x megacore path).
    x3 = jax.random.normal(jax.random.PRNGKey(2), (1024, 5), jnp.float32)
    out3 = agunet_forward(x3, params)[0]
    jax.block_until_ready(out3)
    assert out3.shape == (1024, 1), out3.shape
    assert jnp.allclose(out3, _reference(x3, params, bf16=True),
                        atol=2e-3, rtol=2e-3), "mismatch on split grid"

    print("KERNEL_OK")
</pallas_src>

<mosaic_0001>
module attributes {stable_mosaic.version = 11 : i64} {
  func.func @_agunet_mlp_kernel(%arg0: i32, %arg1: memref<128x5xf32, #tpu.memory_space<vmem>>, %arg2: memref<128x5xbf16, #tpu.memory_space<vmem>>, %arg3: memref<128x1xf32, #tpu.memory_space<vmem>>, %arg4: memref<64x128xbf16, #tpu.memory_space<vmem>>, %arg5: memref<64x1xf32, #tpu.memory_space<vmem>>, %arg6: memref<8x64xbf16, #tpu.memory_space<vmem>>, %arg7: memref<1x1xf32, #tpu.memory_space<smem>>, %arg8: memref<1x128xf32, #tpu.memory_space<vmem>>) attributes {dimension_semantics = [#tpu.dimension_semantics<parallel>], iteration_bounds = array<i64: 1>, scalar_prefetch = 0 : i64, scratch_operands = 0 : i64, tpu.core_type = #tpu.core_type<tc>, window_params = [{transform_indices = @transform_0, window_bounds = array<i64: 128, 5>}, {pipeline_mode = #tpu.pipeline_mode<synchronous>, transform_indices = @transform_1, window_bounds = array<i64: 128, 5>}, {pipeline_mode = #tpu.pipeline_mode<synchronous>, transform_indices = @transform_2, window_bounds = array<i64: 128, 1>}, {pipeline_mode = #tpu.pipeline_mode<synchronous>, transform_indices = @transform_3, window_bounds = array<i64: 64, 128>}, {pipeline_mode = #tpu.pipeline_mode<synchronous>, transform_indices = @transform_4, window_bounds = array<i64: 64, 1>}, {pipeline_mode = #tpu.pipeline_mode<synchronous>, transform_indices = @transform_5, window_bounds = array<i64: 8, 64>}, {transform_indices = @transform_6, window_bounds = array<i64: 1, 1>}, {transform_indices = @transform_7, window_bounds = array<i64: 1, 128>}]} {
    %c0 = arith.constant 0 : index
    %c0_0 = arith.constant 0 : index
    %0 = vector.load %arg1[%c0, %c0_0] : memref<128x5xf32, #tpu.memory_space<vmem>>, vector<128x5xf32>
    %1 = arith.truncf %0 : vector<128x5xf32> to vector<128x5xbf16>
    %c0_1 = arith.constant 0 : index
    %c0_2 = arith.constant 0 : index
    %2 = vector.load %arg2[%c0_1, %c0_2] : memref<128x5xbf16, #tpu.memory_space<vmem>>, vector<128x5xbf16>
    %cst = arith.constant dense<0.000000e+00> : vector<128x128xf32>
    %3 = tpu.matmul %2, %1, %cst {dimension_numbers = #tpu.dot_dimension_numbers<[1], [1], [0], [0], [0, 0, 1, 0], [], []>} : vector<128x5xbf16>, vector<128x5xbf16>, vector<128x128xf32> -> vector<128x128xf32>
    %c0_3 = arith.constant 0 : index
    %c0_4 = arith.constant 0 : index
    %4 = vector.load %arg3[%c0_3, %c0_4] : memref<128x1xf32, #tpu.memory_space<vmem>>, vector<128x1xf32>
    %5 = vector.broadcast %4 : vector<128x1xf32> to vector<128x128xf32>
    %6 = arith.addf %3, %5 : vector<128x128xf32>
    %cst_5 = arith.constant 0.000000e+00 : f32
    %7 = vector.broadcast %cst_5 : f32 to vector<128x128xf32>
    %8 = arith.maximumf %6, %7 : vector<128x128xf32>
    %c0_6 = arith.constant 0 : index
    %c0_7 = arith.constant 0 : index
    %9 = vector.load %arg4[%c0_6, %c0_7] : memref<64x128xbf16, #tpu.memory_space<vmem>>, vector<64x128xbf16>
    %10 = arith.truncf %8 : vector<128x128xf32> to vector<128x128xbf16>
    %cst_8 = arith.constant dense<0.000000e+00> : vector<64x128xf32>
    %11 = tpu.matmul %9, %10, %cst_8 {dimension_numbers = #tpu.dot_dimension_numbers<[1], [0], [0], [1], [0, 0, 1, 1], [], []>} : vector<64x128xbf16>, vector<128x128xbf16>, vector<64x128xf32> -> vector<64x128xf32>
    %c0_9 = arith.constant 0 : index
    %c0_10 = arith.constant 0 : index
    %12 = vector.load %arg5[%c0_9, %c0_10] : memref<64x1xf32, #tpu.memory_space<vmem>>, vector<64x1xf32>
    %13 = vector.broadcast %12 : vector<64x1xf32> to vector<64x128xf32>
    %14 = arith.addf %11, %13 : vector<64x128xf32>
    %cst_11 = arith.constant 0.000000e+00 : f32
    %15 = vector.broadcast %cst_11 : f32 to vector<64x128xf32>
    %16 = arith.maximumf %14, %15 : vector<64x128xf32>
    %c0_12 = arith.constant 0 : index
    %c0_13 = arith.constant 0 : index
    %17 = vector.load %arg6[%c0_12, %c0_13] : memref<8x64xbf16, #tpu.memory_space<vmem>>, vector<8x64xbf16>
    %18 = arith.truncf %16 : vector<64x128xf32> to vector<64x128xbf16>
    %cst_14 = arith.constant dense<0.000000e+00> : vector<8x128xf32>
    %19 = tpu.matmul %17, %18, %cst_14 {dimension_numbers = #tpu.dot_dimension_numbers<[1], [0], [0], [1], [0, 0, 1, 1], [], []>} : vector<8x64xbf16>, vector<64x128xbf16>, vector<8x128xf32> -> vector<8x128xf32>
    %20 = vector.extract_strided_slice %19 {offsets = [0, 0], sizes = [1, 128], strides = [1, 1]} : vector<8x128xf32> to vector<1x128xf32>
    %c0_15 = arith.constant 0 : index
    %c0_16 = arith.constant 0 : index
    %21 = memref.load %arg7[%c0_15, %c0_16] : memref<1x1xf32, #tpu.memory_space<smem>>
    %22 = vector.broadcast %21 : f32 to vector<1x128xf32>
    %23 = arith.addf %20, %22 : vector<1x128xf32>
    %c0_17 = arith.constant 0 : index
    %c0_18 = arith.constant 0 : index
    %24 = vector.load %arg8[%c0_17, %c0_18] : memref<1x128xf32, #tpu.memory_space<vmem>>, vector<1x128xf32>
    tpu.vector_store %arg8[%c0_17, %c0_18], %23 {strides = array<i32>} : memref<1x128xf32, #tpu.memory_space<vmem>>, vector<1x128xf32>,
    return
  }
  func.func @transform_0(%arg0: i32) -> (i32, i32) {
    %c0_i32 = arith.constant 0 : i32
    %c0_i32_0 = arith.constant 0 : i32
    return %arg0, %c0_i32 : i32, i32
  }
  func.func @transform_1(%arg0: i32) -> (i32, i32) {
    %c0_i32 = arith.constant 0 : i32
    %c0_i32_0 = arith.constant 0 : i32
    %c0_i32_1 = arith.constant 0 : i32
    return %c0_i32, %c0_i32_0 : i32, i32
  }
  func.func @transform_2(%arg0: i32) -> (i32, i32) {
    %c0_i32 = arith.constant 0 : i32
    %c0_i32_0 = arith.constant 0 : i32
    %c0_i32_1 = arith.constant 0 : i32
    return %c0_i32, %c0_i32_0 : i32, i32
  }
  func.func @transform_3(%arg0: i32) -> (i32, i32) {
    %c0_i32 = arith.constant 0 : i32
    %c0_i32_0 = arith.constant 0 : i32
    %c0_i32_1 = arith.constant 0 : i32
    return %c0_i32, %c0_i32_0 : i32, i32
  }
  func.func @transform_4(%arg0: i32) -> (i32, i32) {
    %c0_i32 = arith.constant 0 : i32
    %c0_i32_0 = arith.constant 0 : i32
    %c0_i32_1 = arith.constant 0 : i32
    return %c0_i32, %c0_i32_0 : i32, i32
  }
  func.func @transform_5(%arg0: i32) -> (i32, i32) {
    %c0_i32 = arith.constant 0 : i32
    %c0_i32_0 = arith.constant 0 : i32
    %c0_i32_1 = arith.constant 0 : i32
    return %c0_i32, %c0_i32_0 : i32, i32
  }
  func.func @transform_6(%arg0: i32) -> (i32, i32) {
    %c0_i32 = arith.constant 0 : i32
    %c0_i32_0 = arith.constant 0 : i32
    %c0_i32_1 = arith.constant 0 : i32
    return %c0_i32, %c0_i32_0 : i32, i32
  }
  func.func @transform_7(%arg0: i32) -> (i32, i32) {
    %c0_i32 = arith.constant 0 : i32
    %c0_i32_0 = arith.constant 0 : i32
    return %c0_i32, %arg0 : i32, i32
  }
}

</mosaic_0001>

<bundles_post_ra>
// kernel: tpu_custom_call.1
= control target key start
LH: loop header
LB: loop body
LE: loop exit
PB: predicated region body
PF: predicated region fallthrough
CT: control target
= control target key end

     0   :  { %vm205_vm0 = vcmask 39936   ;;  %v767_v5 = vmov 0   ;;  %s1009_s0 = inlined_call_operand.vmem [shape: f32[128,5], index: 0, kind: input, shape index: {}]   ;;  %s1010_s1 = inlined_call_operand.vmem [shape: bf16[128,5], index: 1, kind: input, shape index: {}]   ;;  %s1011_s2 = inlined_call_operand.vmem [shape: f32[128,1], index: 2, kind: input, shape index: {}]   ;;  %s1012_s3 = inlined_call_operand.vmem [shape: bf16[64,128], index: 3, kind: input, shape index: {}]   ;;  %s1013_s4 = inlined_call_operand.vmem [shape: f32[64,1], index: 4, kind: input, shape index: {}]   ;;  %s1014_s5 = inlined_call_operand.vmem [shape: bf16[8,64], index: 5, kind: input, shape index: {}]   ;;  %s1015_s6 = inlined_call_operand.<no memory space> [shape: f32[1,1], index: 6, kind: input, shape index: {}]   ;;  %s1016_s7 = inlined_call_operand.hbm [shape: f32[1,128], index: 7, kind: output, shape index: {}]  }
   0x1   :  { %v29_v0 = vld [vmem:[%s1009_s0] sm:$0xff]  ;;  %v30_v1 = vld [vmem:[%s1009_s0 + $0x8] sm:$0xff]  ;;  %v31_v2 = vld [vmem:[%s1009_s0 + $0x10] sm:$0xff]  ;;  %729 = vset.pattern.permute.xlu0 %v767_v5  ;;  %730 = vset.pattern.permute.xlu1 %v767_v5 }
   0x2   :  { %v45_v3 = vpack.c.bf16 %v30_v1, %v29_v0  ;;  %v32_v4 = vld [vmem:[%s1009_s0 + $0x18] sm:$0xff]  ;;  %v33_v8 = vld [vmem:[%s1009_s0 + $0x20] sm:$0xff]  ;;  %v34_v9 = vld [vmem:[%s1009_s0 + $0x28] sm:$0xff] }
   0x3   :  { %v46_v6 = vpack.c.bf16 %v32_v4, %v31_v2  ;;  %v731_v10 = vld [vmem:[%s1010_s1] sm:$0xff]   ;;  %v47_v12 = vpack.c.bf16 %v34_v9, %v33_v8  ;;  %v71_v14 = vld [vmem:[%s1011_s2 + $0x10] sm:$0xff]  ;;  %v36_v16 = vld [vmem:[%s1009_s0 + $0x38] sm:$0xff] }
   0x4   :  { %717 = vmatprep.subr.msk.bf16.mxu0 %vm205_vm0, %v45_v3  ;;  %v231_v7 = vsel %vm205_vm0, %v45_v3, 0  ;;  %665 = vmatprep.mubr.msk.bf16.mxu0 %vm205_vm0, %v731_v10  ;;  %v69_v13 = vld [vmem:[%s1011_s2] sm:$0xff]  ;;  %v35_v15 = vld [vmem:[%s1009_s0 + $0x30] sm:$0xff]  ;;  %v70_v17 = vld [vmem:[%s1011_s2 + $0x8] sm:$0xff] }
   0x5   :  { %650 = vmatpush3.bf16.xpose.msra.mxu0 %v231_v7  ;;  %v234_v11 = vsel %vm205_vm0, %v46_v6, 0  ;;  %87 = vperm.xlu0 %729, %v69_v13   ;;  %v72_v18 = vld [vmem:[%s1011_s2 + $0x18] sm:$0xff]  ;;  %v237_v19 = vsel %vm205_vm0, %v47_v12, 0  ;;  %v48_v20 = vpack.c.bf16 %v36_v16, %v35_v15  ;;  %v73_v21 = vld [vmem:[%s1011_s2 + $0x20] sm:$0xff]  ;;  %v74_v22 = vld [vmem:[%s1011_s2 + $0x28] sm:$0xff] }
   0x6   :  { %718 = vmatprep.subr.msk.bf16.mxu0 %vm205_vm0, %v46_v6  ;;  %97 = vperm.xlu1 %730, %v71_v14   ;;  %v37_v23 = vld [vmem:[%s1009_s0 + $0x40] sm:$0xff]  ;;  %v38_v24 = vld [vmem:[%s1009_s0 + $0x48] sm:$0xff]  ;;  %v75_v25 = vld [vmem:[%s1011_s2 + $0x30] sm:$0xff] }
   0x7   :  { %v76_v26 = vld [vmem:[%s1011_s2 + $0x38] sm:$0xff] }
   0x9   :  { %92 = vperm.xlu0 %729, %v70_v17  }
   0xa   :  { %102 = vperm.xlu1 %730, %v72_v18  }
   0xd   :  { %652 = vmatpush3.bf16.xpose.msra.mxu0 %v234_v11  ;;  %107 = vperm.xlu0 %729, %v73_v21  }
   0xe   :  { %719 = vmatprep.subr.msk.bf16.mxu0 %vm205_vm0, %v47_v12  ;;  %112 = vperm.xlu1 %730, %v74_v22  }
  0x15   :  { %654 = vmatpush3.bf16.xpose.msra.mxu0 %v237_v19 }
  0x16   :  { %720 = vmatprep.subr.msk.bf16.mxu0 %vm205_vm0, %v48_v20 }
  0x17   :  { %13 = vsyncpa [#allocation4], 0  ;;  %v240_v27 = vsel %vm205_vm0, %v48_v20, 0  ;;  %v49_v28 = vpack.c.bf16 %v38_v24, %v37_v23  ;;  %117 = vperm.xlu0 %729, %v75_v25   ;;  %122 = vperm.xlu1 %730, %v76_v26   ;;  %v77_v29 = vld [vmem:[%s1011_s2 + $0x40] sm:$0xff]  ;;  %v78_v30 = vld [vmem:[%s1011_s2 + $0x48] sm:$0xff]  ;;  %vm769_vm1 = vmmov 0  }
  0x18   :  { %v39_v31 = vld [vmem:[%s1009_s0 + $0x50] sm:$0xff]  ;;  %v40_v32 = vld [vmem:[%s1009_s0 + $0x58] sm:$0xff]  ;;  %v81_v37 = vld [vmem:[%s1011_s2 + $0x60] sm:$0xff]  ;;  %vm533_vm2 = vcmask 523264   ;;  %s770_s10 = smov [#allocation3]  }
  0x19   :  { %v79_v33 = vld [vmem:[%s1011_s2 + $0x50] sm:$0xff]  ;;  %v80_v34 = vld [vmem:[%s1011_s2 + $0x58] sm:$0xff]  ;;  %v243_v35 = vsel %vm205_vm0, %v49_v28, 0  ;;  %v50_v36 = vpack.c.bf16 %v40_v32, %v39_v31  ;;  %v82_v38 = vld [vmem:[%s1011_s2 + $0x68] sm:$0xff]  ;;  %s587_s11 = sshll.u32 %s770_s10, 4  ;;  %s588_s11 = int_to_ptr.vmem [resolvable:$true] %s587_s11 }
  0x1a   :  { %v41_v39 = vld [vmem:[%s1009_s0 + $0x60] sm:$0xff]  ;;  %v42_v40 = vld [vmem:[%s1009_s0 + $0x68] sm:$0xff]  ;;  %v83_v41 = vld [vmem:[%s1011_s2 + $0x70] sm:$0xff]  ;;  %s743_s12 = scalar_lea.vmem %s588_s11, 16  ;;  %s747_s13 = scalar_lea.vmem %s588_s11, 32 }
  0x1b   :  { %127 = vperm.xlu0 %729, %v77_v29   ;;  %132 = vperm.xlu1 %730, %v78_v30   ;;  %v84_v42 = vld [vmem:[%s1011_s2 + $0x78] sm:$0xff]  ;;  %v246_v43 = vsel %vm205_vm0, %v50_v36, 0  ;;  %v51_v44 = vpack.c.bf16 %v42_v40, %v41_v39  ;;  %v383_v45 = vld [vmem:[%s1013_s4] sm:$0xff]  ;;  %v384_v46 = vld [vmem:[%s1013_s4 + $0x8] sm:$0xff]  ;;  %p744_p0 = scmp.ne.s32.totalorder %s588_s11, %s743_s12  ;;  %p748_p1 = scmp.lt.s32.totalorder %s588_s11, %s588_s11 }
  0x1c   :  { %v43_v47 = vld [vmem:[%s1009_s0 + $0x70] sm:$0xff]  ;;  %v44_v48 = vld [vmem:[%s1009_s0 + $0x78] sm:$0xff]  ;;  %v387_v53 = vld [vmem:[%s1013_s4 + $0x20] sm:$0xff]  ;;  %p749_p2 = scmp.lt.s32.totalorder %s747_s13, %s743_s12 }
  0x1d   :  { %656 = vmatpush3.bf16.xpose.msra.mxu0 %v240_v27  ;;  %v385_v49 = vld [vmem:[%s1013_s4 + $0x10] sm:$0xff]  ;;  %v386_v50 = vld [vmem:[%s1013_s4 + $0x18] sm:$0xff]  ;;  %v249_v51 = vsel %vm205_vm0, %v51_v44, 0  ;;  %v52_v52 = vpack.c.bf16 %v44_v48, %v43_v47  ;;  %v388_v54 = vld [vmem:[%s1013_s4 + $0x28] sm:$0xff] }
  0x1e   :  { %721 = vmatprep.subr.msk.bf16.mxu0 %vm205_vm0, %v49_v28  ;;  %v389_v55 = vld [vmem:[%s1013_s4 + $0x30] sm:$0xff]  ;;  %v390_v56 = vld [vmem:[%s1013_s4 + $0x38] sm:$0xff]  ;;  %v732_v58 = vld [vmem:[%s1010_s1 + $0x8] sm:$0xff]   ;;  %p750_p3 = por %p749_p2, %p748_p1 }
  0x1f   :  { %137 = vperm.xlu0 %729, %v79_v33   ;;  %142 = vperm.xlu1 %730, %v80_v34   ;;  %v252_v57 = vsel %vm205_vm0, %v52_v52, 0  ;;  %v733_v59 = vld [vmem:[%s1010_s1 + $0x10] sm:$0xff]   ;;  %v734_v60 = vld [vmem:[%s1010_s1 + $0x18] sm:$0xff]   ;;  %v735_v61 = vld [vmem:[%s1010_s1 + $0x20] sm:$0xff]  }
  0x20   :  { %v736_v62 = vld [vmem:[%s1010_s1 + $0x28] sm:$0xff]   ;;  %v737_v63 = vld [vmem:[%s1010_s1 + $0x30] sm:$0xff]   ;;  %v738_v0 = vld [vmem:[%s1010_s1 + $0x38] sm:$0xff]   ;;  %p751_p4 = pnand %p750_p3, %p744_p0 }
  0x21   :  { %v739_v1 = vld [vmem:[%s1012_s3] sm:$0xff]  }
  0x22   :  { %697 = vmatprep.mubr.bf16.mxu1 %v739_v1 }
  0x23   :  { %147 = vperm.xlu0 %729, %v81_v37   ;;  %152 = vperm.xlu1 %730, %v82_v38  }
  0x25   :  { %658 = vmatpush3.bf16.xpose.msra.mxu0 %v243_v35 }
  0x26   :  { %722 = vmatprep.subr.msk.bf16.mxu0 %vm205_vm0, %v50_v36 }
  0x27   :  { %157 = vperm.xlu0 %729, %v83_v41   ;;  %162 = vperm.xlu1 %730, %v84_v42  }
  0x2b   :  { %393 = vperm.xlu0 %729, %v383_v45   ;;  %398 = vperm.xlu1 %730, %v384_v46  }
  0x2d   :  { %660 = vmatpush3.bf16.xpose.msra.mxu0 %v246_v43 }
  0x2e   :  { %723 = vmatprep.subr.msk.bf16.mxu0 %vm205_vm0, %v51_v44 }
  0x2f   :  { %403 = vperm.xlu0 %729, %v385_v49   ;;  %408 = vperm.xlu1 %730, %v386_v50  }
  0x33   :  { %413 = vperm.xlu0 %729, %v387_v53   ;;  %418 = vperm.xlu1 %730, %v388_v54  }
  0x35   :  { %662 = vmatpush3.bf16.xpose.msra.mxu0 %v249_v51 }
  0x36   :  { %724 = vmatprep.subr.msk.bf16.mxu0 %vm205_vm0, %v52_v52 }
  0x37   :  { %423 = vperm.xlu0 %729, %v389_v55   ;;  %428 = vperm.xlu1 %730, %v390_v56  }
  0x3d   :  { %664 = vmatpush3.bf16.xpose.msra.mxu0 %v252_v57 }
  0x44   :  { %666 = vmatmul.mubr.msk.bf16.vlgmr.msra.gmra.mrb[0].mxu0 %vm205_vm0, %v732_v58 }
  0x45   :  { %669 = vmatprep.mubr.msk.bf16.mxu0 %vm205_vm0, %v733_v59 }
  0x4c   :  { %670 = vmatmul.mubr.msk.bf16.gmra.mrb[4].mxu0 %vm205_vm0, %v734_v60 }
  0x4d   :  { %673 = vmatprep.mubr.msk.bf16.mxu0 %vm205_vm0, %v735_v61 }
  0x54   :  { %674 = vmatmul.mubr.msk.bf16.gmra.mrb[8].mxu0 %vm205_vm0, %v736_v62 }
  0x55   :  { %677 = vmatprep.mubr.msk.bf16.mxu0 %vm205_vm0, %v737_v63 }
  0x5c   :  { %678 = vmatmul.mubr.msk.bf16.gmra.mrb[12].mxu0 %vm205_vm0, %v738_v0 }
  0x84   :  { %v88_v2 = vpop.permute.xlu0 %87 }
  0x85   :  { %v98_v3 = vpop.permute.xlu1 %97 }
  0x88   :  { %v93_v4 = vpop.permute.xlu0 %92 }
  0x89   :  { %v103_v5 = vpop.permute.xlu1 %102 }
  0x8c   :  { %v108_v6 = vpop.permute.xlu0 %107 }
  0x8d   :  { %v113_v7 = vpop.permute.xlu1 %112 }
  0x96   :  { %v118_v8 = vpop.permute.xlu0 %117  ;;  %v123_v12 = vpop.permute.xlu1 %122 }
  0x9a   :  { %v128_v20 = vpop.permute.xlu0 %127  ;;  %v133_v24 = vpop.permute.xlu1 %132 }
  0x9e   :  { %v138_v33 = vpop.permute.xlu0 %137  ;;  %v143_v37 = vpop.permute.xlu1 %142 }
  0xa2   :  { %v148_v45 = vpop.permute.xlu0 %147  ;;  %v153_v50 = vpop.permute.xlu1 %152 }
  0xa6   :  { %v158_v57 = vpop.permute.xlu0 %157  ;;  %v163_v62 = vpop.permute.xlu1 %162 }
 0x117   :  { %v667_v9 = vpop.f32.mrb[0].mxu0 }
 0x118   :  { %v297_v10 = vadd.f32 %v667_v9, %v98_v3  ;;  %v288_v11 = vpop.f32.mrb[1].mxu0 }
 0x119   :  { %v289_v13 = vadd.f32 %v288_v11, %v88_v2  ;;  %v668_v14 = vpop.f32.mrb[2].mxu0  ;;  %v741_v11 = vld [vmem:[%s1012_s3 + $0x10] sm:$0xff]  }
 0x11a   :  { %v300_v15 = vadd.f32 %v668_v14, %v103_v5  ;;  %v291_v16 = vpop.f32.mrb[3].mxu0  ;;  %v353_v18 = vmax.f32 %v297_v10, 0.0  ;;  %v740_v10 = vld [vmem:[%s1012_s3 + $0x8] sm:$0xff]   ;;  %v394_v14 = vpop.permute.xlu0 %393 }
 0x11b   :  { %v292_v17 = vadd.f32 %v291_v16, %v93_v4  ;;  %v351_v21 = vmax.f32 %v289_v13, 0.0  ;;  %v768_v13 = vmov 0.0  }
 0x11c   :  { %v354_v19 = vmax.f32 %v300_v15, 0.0  ;;  %v399_v15 = vpop.permute.xlu1 %398 }
 0x11d   :  { %v352_v22 = vmax.f32 %v292_v17, 0.0 }
 0x11e   :  { %v376_v23 = vpack.c.bf16 %v354_v19, %v353_v18  ;;  %v404_v16 = vpop.permute.xlu0 %403 }
 0x11f   :  { %v671_v25 = vpop.f32.mrb[4].mxu0  ;;  %v375_v26 = vpack.c.bf16 %v352_v22, %v351_v21 }
 0x120   :  { %v313_v27 = vadd.f32 %v671_v25, %v118_v8  ;;  %v304_v28 = vpop.f32.mrb[5].mxu0  ;;  %v409_v17 = vpop.permute.xlu1 %408 }
 0x121   :  { %v305_v29 = vadd.f32 %v304_v28, %v108_v6  ;;  %v672_v30 = vpop.f32.mrb[6].mxu0  ;;  %681 = vmatprep.subr.bf16.mxu1 %v375_v26 }
 0x122   :  { %v316_v31 = vadd.f32 %v672_v30, %v123_v12  ;;  %v307_v32 = vpop.f32.mrb[7].mxu0  ;;  %682 = vmatpush3.bf16.msra.mxu1 %v375_v26  ;;  %v357_v35 = vmax.f32 %v313_v27, 0.0  ;;  %v742_v12 = vld [vmem:[%s1012_s3 + $0x18] sm:$0xff]   ;;  %v414_v21 = vpop.permute.xlu0 %413 }
 0x123   :  { %v308_v34 = vadd.f32 %v307_v32, %v113_v7  ;;  %683 = vmatprep.subr.bf16.mxu1 %v376_v23  ;;  %v355_v38 = vmax.f32 %v305_v29, 0.0 }
 0x124   :  { %v358_v36 = vmax.f32 %v316_v31, 0.0  ;;  %v419_v26 = vpop.permute.xlu1 %418 }
 0x125   :  { %v356_v39 = vmax.f32 %v308_v34, 0.0 }
 0x126   :  { %v378_v40 = vpack.c.bf16 %v358_v36, %v357_v35  ;;  %684 = vmatpush3.bf16.msra.mxu1 %v376_v23 }
 0x127   :  { %v377_v41 = vpack.c.bf16 %v356_v39, %v355_v38  ;;  %v675_v42 = vpop.f32.mrb[8].mxu0 }
 0x128   :  { %v329_v43 = vadd.f32 %v675_v42, %v138_v33  ;;  %v320_v44 = vpop.f32.mrb[9].mxu0  ;;  %v424_v33 = vpop.permute.xlu0 %423 }
 0x129   :  { %v321_v46 = vadd.f32 %v320_v44, %v128_v20  ;;  %v676_v47 = vpop.f32.mrb[10].mxu0  ;;  %685 = vmatprep.subr.bf16.mxu1 %v377_v41  ;;  %v429_v38 = vpop.permute.xlu1 %428 }
 0x12a   :  { %v332_v48 = vadd.f32 %v676_v47, %v143_v37  ;;  %v323_v49 = vpop.f32.mrb[11].mxu0  ;;  %686 = vmatpush3.bf16.msra.mxu1 %v377_v41  ;;  %v361_v52 = vmax.f32 %v329_v43, 0.0 }
 0x12b   :  { %v324_v51 = vadd.f32 %v323_v49, %v133_v24  ;;  %687 = vmatprep.subr.bf16.mxu1 %v378_v40  ;;  %v359_v54 = vmax.f32 %v321_v46, 0.0 }
 0x12c   :  { %v362_v53 = vmax.f32 %v332_v48, 0.0 }
 0x12d   :  { %v360_v55 = vmax.f32 %v324_v51, 0.0  ;;  %v578_v51 = vstv %s1015_s6 }
 0x12e   :  { %v380_v56 = vpack.c.bf16 %v362_v53, %v361_v52  ;;  %688 = vmatpush3.bf16.msra.mxu1 %v378_v40 }
 0x12f   :  { %v379_v58 = vpack.c.bf16 %v360_v55, %v359_v54  ;;  %v679_v59 = vpop.f32.mrb[12].mxu0 }
 0x130   :  { %v345_v60 = vadd.f32 %v679_v59, %v158_v57  ;;  %v336_v61 = vpop.f32.mrb[13].mxu0 }
 0x131   :  { %v337_v63 = vadd.f32 %v336_v61, %v148_v45  ;;  %v680_v0 = vpop.f32.mrb[14].mxu0  ;;  %689 = vmatprep.subr.bf16.mxu1 %v379_v58 }
 0x132   :  { %v348_v1 = vadd.f32 %v680_v0, %v163_v62  ;;  %v339_v2 = vpop.f32.mrb[15].mxu0  ;;  %690 = vmatpush3.bf16.msra.mxu1 %v379_v58  ;;  %v365_v4 = vmax.f32 %v345_v60, 0.0 }
 0x133   :  { %v340_v3 = vadd.f32 %v339_v2, %v153_v50  ;;  %691 = vmatprep.subr.bf16.mxu1 %v380_v56  ;;  %v363_v6 = vmax.f32 %v337_v63, 0.0  ;;  %v528_v50 = vld [vmem:[%s1014_s5] sm:$0xf] }
 0x134   :  { %v366_v5 = vmax.f32 %v348_v1, 0.0 }
 0x135   :  { %v364_v7 = vmax.f32 %v340_v3, 0.0 }
 0x136   :  { %v382_v8 = vpack.c.bf16 %v366_v5, %v365_v4  ;;  %692 = vmatpush3.bf16.msra.mxu1 %v380_v56 }
 0x137   :  { %v381_v9 = vpack.c.bf16 %v364_v7, %v363_v6 }
 0x139   :  { %693 = vmatprep.subr.bf16.mxu1 %v381_v9 }
 0x13a   :  { %694 = vmatpush3.bf16.msra.mxu1 %v381_v9 }
 0x13b   :  { %695 = vmatprep.subr.bf16.mxu1 %v382_v8 }
 0x13e   :  { %696 = vmatpush3.bf16.msra.mxu1 %v382_v8 }
 0x13f   :  { %705 = vmatprep.subr.bf16.mxu1 %v768_v13 }
 0x141   :  { %698 = vmatmul.mubr.bf16.vlgmr.msra.gmra.mrb[0].mxu1 %v740_v10 }
 0x142   :  { %701 = vmatprep.mubr.bf16.mxu1 %v741_v11 }
 0x149   :  { %702 = vmatmul.mubr.bf16.gmra.mrb[4].mxu1 %v742_v12 }
 0x14a   :  { %713 = vmatprep.mubr.msk.bf16.mxu1 %vm769_vm1, %v768_v13 }
 0x214   :  { %v699_v18 = vpop.f32.mrb[0].mxu1 }
 0x215   :  { %v498_v19 = vadd.f32 %v699_v18, %v404_v16  ;;  %v489_v20 = vpop.f32.mrb[1].mxu1 }
 0x216   :  { %v490_v22 = vadd.f32 %v489_v20, %v394_v14  ;;  %v700_v23 = vpop.f32.mrb[2].mxu1 }
 0x217   :  { %v501_v24 = vadd.f32 %v700_v23, %v409_v17  ;;  %v492_v25 = vpop.f32.mrb[3].mxu1  ;;  %v522_v28 = vmax.f32 %v498_v19, 0.0 }
 0x218   :  { %v493_v27 = vadd.f32 %v492_v25, %v399_v15  ;;  %v520_v30 = vmax.f32 %v490_v22, 0.0 }
 0x219   :  { %v523_v29 = vmax.f32 %v501_v24, 0.0 }
 0x21a   :  { %v521_v31 = vmax.f32 %v493_v27, 0.0 }
 0x21b   :  { %v530_v32 = vpack.c.bf16 %v523_v29, %v522_v28 }
 0x21c   :  { %v529_v34 = vpack.c.bf16 %v521_v31, %v520_v30  ;;  %v703_v35 = vpop.f32.mrb[4].mxu1 }
 0x21d   :  { %v514_v36 = vadd.f32 %v703_v35, %v424_v33  ;;  %v505_v37 = vpop.f32.mrb[5].mxu1 }
 0x21e   :  { %v506_v39 = vadd.f32 %v505_v37, %v414_v21  ;;  %v704_v40 = vpop.f32.mrb[6].mxu1  ;;  %706 = vmatpush3.bf16.msra.mxu1 %v529_v34 }
 0x21f   :  { %v517_v41 = vadd.f32 %v704_v40, %v429_v38  ;;  %v508_v42 = vpop.f32.mrb[7].mxu1  ;;  %707 = vmatprep.subr.bf16.mxu1 %v768_v13  ;;  %v526_v44 = vmax.f32 %v514_v36, 0.0 }
 0x220   :  { %v509_v43 = vadd.f32 %v508_v42, %v419_v26  ;;  %v524_v46 = vmax.f32 %v506_v39, 0.0 }
 0x221   :  { %v527_v45 = vmax.f32 %v517_v41, 0.0 }
 0x222   :  { %v525_v47 = vmax.f32 %v509_v43, 0.0  ;;  %708 = vmatpush3.bf16.msra.mxu1 %v530_v32 }
 0x223   :  { %v532_v48 = vpack.c.bf16 %v527_v45, %v526_v44  ;;  %709 = vmatprep.subr.bf16.mxu1 %v768_v13 }
 0x224   :  { %v531_v49 = vpack.c.bf16 %v525_v47, %v524_v46 }
 0x226   :  { %710 = vmatpush3.bf16.msra.mxu1 %v531_v49 }
 0x227   :  { %711 = vmatprep.subr.bf16.mxu1 %v768_v13 }
 0x22a   :  { %712 = vmatpush3.bf16.msra.mxu1 %v532_v48 }
 0x22d   :  { %714 = vmatmul.mubr.msk.bf16.vlgmr.msra.gmra.mrb[8].mxu1 %vm533_vm2, %v528_v50 }
 0x300   :  { %v571_v52 = vpop.f32.mrb[8].mxu1 }
 0x301   :  { %v579_v53 = vadd.f32 %v578_v51, %v571_v52  ;;  %v715_v54 = vpop.f32.mrb[9].mxu1 }
 0x302   :  { %v574_v55 = vpop.f32.mrb[10].mxu1 }
 0x303   :  { %580 = vst [vmem:[#allocation3] sm:$0x1] %v579_v53  ;;  %v716_v56 = vpop.f32.mrb[11].mxu1 }
 0x304   :  { %754 = shalt.err (!%p751_p4)
}
 0x305   :  { %s755_s6 = scalar_lea.hbm %s1016_s7, 16 }
 0x306   :  { %p756_p5 = scmp.ne.s32.totalorder %s1016_s7, %s755_s6  ;;  %p759_p6 = scmp.lt.u32.totalorder %s755_s6, %s1016_s7 }
 0x308   :  { %p761_p7 = pnand %p759_p6, %p756_p5 }
 0x30a   :  { %764 = shalt.err (!%p761_p7)
}
 0x30b   :  { %590 = dma.vmem_to_hbm [thread:$0]  %s588_s11, 16, %s1016_s7, [#allocation4]  }
 0x30c   :  { %765 = dma.done.wait [#allocation4], 16  }
 0x30d   :  { %766 = vsyncadd [#allocation4], 4294967280 }
 0x30e   :  { %594 = vsyncpa [#allocation4], 1 }

</bundles_post_ra>
